<compile_context>
chip_gen: v7x
topology: tpu7x:2x2x1
jax: 0.10.0
libtpu: 0.0.40
codegen_flags: <defaults>
</compile_context>

<pallas_src>
import jax
import jax.numpy as jnp
from jax.experimental import pallas as pl
from jax.experimental.pallas import tpu as pltpu

IN_DIM = 36
H1 = 16
H2 = 4
H3 = 1

SELU_ALPHA = 1.6732632423543772848170429916717
SELU_SCALE = 1.0507009873554804934193349852946


def expert_kernel(x_ref, w1_ref, w2_ref, p_ref, o_ref):
    x = x_ref[...]                                   # (tile, 36) natural row-major tile

    # Layer 1 on the MXU, "NT" contraction (feature axis of both operands):
    # result lands batch-on-lanes (16, tile) with no transpose of x anywhere.
    h1 = jax.lax.dot_general(
        w1_ref[...], x, (((1,), (1,)), ((), ())),
        preferred_element_type=jnp.float32)
    h1 = h1 + p_ref[:, 0:1]                          # + b1  (16,1) broadcast over lanes

    # SELU.  (PyTorch uses expm1; exp(x)-1 differs by <~2e-7 in f32 near 0 and
    # is guaranteed to lower on every Mosaic version.)
    h1 = SELU_SCALE * jnp.where(h1 > 0.0, h1, SELU_ALPHA * (jnp.exp(h1) - 1.0))

    # Layer 2 on the MXU: (4,16) @ (16,tile) -> (4,tile), + b2, ReLU.
    h2 = jnp.dot(w2_ref[...], h1, preferred_element_type=jnp.float32)
    h2 = jnp.maximum(h2 + p_ref[:H2, 1:2], 0.0)

    # Layer 3 on the VPU: broadcast-multiply by the w3 column, reduce 4 sublane
    # rows, add b3.  (A (1,4)x(4,tile) MXU matmul would re-latch stationary
    # weights every step for ~8 useful MACs per column.)
    h3 = jnp.sum(h2 * p_ref[:H2, 2:3], axis=0, keepdims=True) + p_ref[:1, 3:4]

    # Sigmoid; torch.sum over the size-1 dim is an identity -> store directly.
    o_ref[...] = 1.0 / (1.0 + jnp.exp(-h3))          # (1, tile), lane-dense store


def _pick_tile(B, tb):
    """Batch-tile selection.

    Small batches: one full-extent block (full-dim blocks are always
    layout-legal).  Otherwise lane-dense tiles (multiple of 128), capped so the
    grid has >=2 steps (so the "parallel" axis can shard across v7x's two
    TensorCores) and never larger than the requested tb.
    Per-chip guidance: tb~4-8K on v5e, >=8K on v6e, 16-32K on v7x.
    """
    if B <= 256:
        return B
    tile = max(128, (min(tb, B) // 128) * 128)
    half = max(128, ((B // 2) // 128) * 128)
    return min(tile, half)


def _vmem_limit_for_tile(tile):
    # Rough VMEM footprint (f32, lane/sublane padded):
    #   x tile (rows pad 36 -> 128 lanes): 512 B/row, double buffered
    #   h1 (16, tile) + one temporary    : 2 * 64 B/col
    #   h2 (4 -> 8 sublanes, tile)       : 32 B/col
    #   output (1 -> 8 sublanes, tile)   : 32 B/col, double buffered
    need = tile * (2 * 512 + 2 * 64 + 32 + 2 * 32) + (2 << 20)
    return need if need > (30 << 20) else None       # only override for big tiles


def expert_forward(x, packed_params, *, tb=8192):
    """x: (B, 36) float32 -> (B,) float32."""
    w1, w2, pvec = packed_params
    B = x.shape[0]

    tile = _pick_tile(B, tb)
    grid = pl.cdiv(B, tile)

    out = pl.pallas_call(
        expert_kernel,
        out_shape=jax.ShapeDtypeStruct((1, B), jnp.float32),
        grid_spec=pltpu.PrefetchScalarGridSpec(
            num_scalar_prefetch=0,
            grid=(grid,),
            in_specs=[
                pl.BlockSpec((tile, IN_DIM), lambda i: (i, 0)),   # x: contiguous row tile
                pl.BlockSpec((H1, IN_DIM), lambda i: (0, 0)),     # w1 (resident)
                pl.BlockSpec((H2, H1), lambda i: (0, 0)),         # w2 (resident)
                pl.BlockSpec((H1, 4), lambda i: (0, 0)),          # packed b1|b2|w3|b3
            ],
            out_specs=pl.BlockSpec((1, tile), lambda i: (0, i)),  # lane-dense output row
        ),
        compiler_params=pltpu.CompilerParams(
            dimension_semantics=("parallel",),
            vmem_limit_bytes=_vmem_limit_for_tile(tile),
        ),
    )(x, w1, w2, pvec)

    return out[0]                                    # (B,)


# ----------------------------- parameters ----------------------------------

def _torch_like_linear_init(key, in_features, out_features):
    """PyTorch nn.Linear default init: U(-1/sqrt(in), 1/sqrt(in)).
    Weight as (out, in) (PyTorch layout), bias as (out,)."""
    kw, kb = jax.random.split(key)
    bound = 1.0 / (float(in_features) ** 0.5)
    w = jax.random.uniform(kw, (out_features, in_features), jnp.float32, -bound, bound)
    b = jax.random.uniform(kb, (out_features,), jnp.float32, -bound, bound)
    return w, b


def init_params(key):
    keys = jax.random.split(key, 5)
    # linear1 / linear2 exist in __init__ but are dead in forward (parity only).
    _ = _torch_like_linear_init(keys[0], IN_DIM, 10)   # linear1
    _ = _torch_like_linear_init(keys[1], IN_DIM, 1)    # linear2
    w1, b1 = _torch_like_linear_init(keys[2], IN_DIM, H1)
    w2, b2 = _torch_like_linear_init(keys[3], H1, H2)
    w3, b3 = _torch_like_linear_init(keys[4], H2, H3)
    return (w1, b1, w2, b2, w3, b3)


def pack_params(params):
    """One-time packing: collapse the four small vectors (b1, b2, w3 row, b3)
    into a single (16, 4) operand so the kernel has 3 parameter inputs."""
    w1, b1, w2, b2, w3, b3 = params
    pvec = jnp.zeros((H1, 4), jnp.float32)
    pvec = pvec.at[:, 0].set(b1)          # col 0: b1 (16)
    pvec = pvec.at[:H2, 1].set(b2)        # col 1: b2 (4, padded)
    pvec = pvec.at[:H2, 2].set(w3[0, :])  # col 2: w3 as a column (4, padded)
    pvec = pvec.at[0, 3].set(b3[0])       # col 3: b3 (scalar, padded)
    return (w1, w2, pvec)


def reference_forward(x, params):
    """Pure-JAX reference (PyTorch semantics)."""
    w1, b1, w2, b2, w3, b3 = params
    h1 = x @ w1.T + b1
    h1 = SELU_SCALE * jnp.where(h1 > 0, h1, SELU_ALPHA * jnp.expm1(h1))
    h2 = jnp.maximum(h1 @ w2.T + b2, 0.0)
    k = jax.nn.sigmoid(h2 @ w3.T + b3)                # (B, 1)
    return jnp.sum(k, axis=1)                         # (B,)


if __name__ == "__main__":
    key = jax.random.PRNGKey(0)
    kx, kp = jax.random.split(key)

    params = init_params(kp)
    packed = pack_params(params)

    # Tolerance note: kernel and reference both use the TPU-default MXU path
    # (bf16-rounded matmul inputs, f32 accumulate); accumulation-order and
    # re-rounding differences bound the mismatch at ~1e-3, hence 2e-3 here.
    # For ~1e-6 f32 parity, pin precision=HIGHEST in both (slower on v7x).
    TOL = 2e-3

    # Small smoke test: single full-extent block.
    B = 8
    x = jax.random.normal(kx, (B, IN_DIM), dtype=jnp.float32)
    out = jax.block_until_ready(expert_forward(x, packed))
    ref = reference_forward(x, params)
    assert out.shape == (B,), out.shape
    assert jnp.allclose(out, ref, atol=TOL, rtol=TOL), (out, ref)

    # Multi-step grid test: two lane-dense 256-row tiles ("parallel" axis).
    B2 = 512
    x2 = jax.random.normal(jax.random.PRNGKey(1), (B2, IN_DIM), dtype=jnp.float32)
    out2 = jax.block_until_ready(expert_forward(x2, packed))
    ref2 = reference_forward(x2, params)
    assert out2.shape == (B2,), out2.shape
    assert jnp.allclose(out2, ref2, atol=TOL, rtol=TOL)

    print("KERNEL_OK")
</pallas_src>

<mosaic_0001>
module attributes {stable_mosaic.version = 11 : i64} {
  func.func @expert_kernel(%arg0: i32, %arg1: memref<8x36xf32, #tpu.memory_space<vmem>>, %arg2: memref<16x36xf32, #tpu.memory_space<vmem>>, %arg3: memref<4x16xf32, #tpu.memory_space<vmem>>, %arg4: memref<16x4xf32, #tpu.memory_space<vmem>>, %arg5: memref<1x8xf32, #tpu.memory_space<vmem>>) attributes {dimension_semantics = [#tpu.dimension_semantics<parallel>], iteration_bounds = array<i64: 1>, scalar_prefetch = 0 : i64, scratch_operands = 0 : i64, tpu.core_type = #tpu.core_type<tc>, window_params = [{transform_indices = @transform_0, window_bounds = array<i64: 8, 36>}, {pipeline_mode = #tpu.pipeline_mode<synchronous>, transform_indices = @transform_1, window_bounds = array<i64: 16, 36>}, {pipeline_mode = #tpu.pipeline_mode<synchronous>, transform_indices = @transform_2, window_bounds = array<i64: 4, 16>}, {pipeline_mode = #tpu.pipeline_mode<synchronous>, transform_indices = @transform_3, window_bounds = array<i64: 16, 4>}, {transform_indices = @transform_4, window_bounds = array<i64: 1, 8>}]} {
    %c0 = arith.constant 0 : index
    %c0_0 = arith.constant 0 : index
    %0 = vector.load %arg1[%c0, %c0_0] : memref<8x36xf32, #tpu.memory_space<vmem>>, vector<8x36xf32>
    %c0_1 = arith.constant 0 : index
    %c0_2 = arith.constant 0 : index
    %1 = vector.load %arg2[%c0_1, %c0_2] : memref<16x36xf32, #tpu.memory_space<vmem>>, vector<16x36xf32>
    %cst = arith.constant dense<0.000000e+00> : vector<16x8xf32>
    %2 = tpu.matmul %1, %0, %cst {dimension_numbers = #tpu.dot_dimension_numbers<[1], [1], [0], [0], [0, 0, 1, 0], [], []>} : vector<16x36xf32>, vector<8x36xf32>, vector<16x8xf32> -> vector<16x8xf32>
    %c0_3 = arith.constant 0 : index
    %c0_4 = arith.constant 0 : index
    %3 = vector.load %arg4[%c0_3, %c0_4] : memref<16x4xf32, #tpu.memory_space<vmem>>, vector<16x1xf32>
    %4 = vector.broadcast %3 : vector<16x1xf32> to vector<16x8xf32>
    %5 = arith.addf %2, %4 : vector<16x8xf32>
    %cst_5 = arith.constant 0.000000e+00 : f32
    %6 = vector.broadcast %cst_5 : f32 to vector<16x8xf32>
    %7 = arith.cmpf ogt, %5, %6 : vector<16x8xf32>
    %8 = math.exp %5 : vector<16x8xf32>
    %cst_6 = arith.constant 1.000000e+00 : f32
    %9 = vector.broadcast %cst_6 : f32 to vector<16x8xf32>
    %10 = arith.subf %8, %9 : vector<16x8xf32>
    %cst_7 = arith.constant 1.67326319 : f32
    %11 = vector.broadcast %cst_7 : f32 to vector<16x8xf32>
    %12 = arith.mulf %11, %10 : vector<16x8xf32>
    %13 = arith.select %7, %5, %12 : vector<16x8xi1>, vector<16x8xf32>
    %cst_8 = arith.constant 1.05070102 : f32
    %14 = vector.broadcast %cst_8 : f32 to vector<16x8xf32>
    %15 = arith.mulf %14, %13 : vector<16x8xf32>
    %c0_9 = arith.constant 0 : index
    %c0_10 = arith.constant 0 : index
    %16 = vector.load %arg3[%c0_9, %c0_10] : memref<4x16xf32, #tpu.memory_space<vmem>>, vector<4x16xf32>
    %cst_11 = arith.constant dense<0.000000e+00> : vector<4x8xf32>
    %17 = tpu.matmul %16, %15, %cst_11 {dimension_numbers = #tpu.dot_dimension_numbers<[1], [0], [0], [1], [0, 0, 1, 1], [], []>} : vector<4x16xf32>, vector<16x8xf32>, vector<4x8xf32> -> vector<4x8xf32>
    %c0_12 = arith.constant 0 : index
    %c1 = arith.constant 1 : index
    %18 = vector.load %arg4[%c0_12, %c1] : memref<16x4xf32, #tpu.memory_space<vmem>>, vector<4x1xf32>
    %19 = vector.broadcast %18 : vector<4x1xf32> to vector<4x8xf32>
    %20 = arith.addf %17, %19 : vector<4x8xf32>
    %cst_13 = arith.constant 0.000000e+00 : f32
    %21 = vector.broadcast %cst_13 : f32 to vector<4x8xf32>
    %22 = arith.maximumf %20, %21 : vector<4x8xf32>
    %c0_14 = arith.constant 0 : index
    %c2 = arith.constant 2 : index
    %23 = vector.load %arg4[%c0_14, %c2] : memref<16x4xf32, #tpu.memory_space<vmem>>, vector<4x1xf32>
    %24 = vector.broadcast %23 : vector<4x1xf32> to vector<4x8xf32>
    %25 = arith.mulf %22, %24 : vector<4x8xf32>
    %cst_15 = arith.constant dense<0.000000e+00> : vector<8xf32>
    %26 = vector.multi_reduction <add>, %25, %cst_15 [0] : vector<4x8xf32> to vector<8xf32>
    %27 = vector.shape_cast %26 : vector<8xf32> to vector<1x8xf32>
    %c0_16 = arith.constant 0 : index
    %c3 = arith.constant 3 : index
    %28 = vector.load %arg4[%c0_16, %c3] : memref<16x4xf32, #tpu.memory_space<vmem>>, vector<1x1xf32>
    %29 = vector.broadcast %28 : vector<1x1xf32> to vector<1x8xf32>
    %30 = arith.addf %27, %29 : vector<1x8xf32>
    %cst_17 = arith.constant 0.000000e+00 : f32
    %31 = vector.broadcast %cst_17 : f32 to vector<1x8xf32>
    %32 = arith.subf %31, %30 : vector<1x8xf32>
    %33 = math.exp %32 : vector<1x8xf32>
    %cst_18 = arith.constant 1.000000e+00 : f32
    %34 = vector.broadcast %cst_18 : f32 to vector<1x8xf32>
    %35 = arith.addf %34, %33 : vector<1x8xf32>
    %cst_19 = arith.constant 1.000000e+00 : f32
    %36 = vector.broadcast %cst_19 : f32 to vector<1x8xf32>
    %37 = arith.divf %36, %35 : vector<1x8xf32>
    %c0_20 = arith.constant 0 : index
    %c0_21 = arith.constant 0 : index
    %38 = vector.load %arg5[%c0_20, %c0_21] : memref<1x8xf32, #tpu.memory_space<vmem>>, vector<1x8xf32>
    tpu.vector_store %arg5[%c0_20, %c0_21], %37 {strides = array<i32>} : memref<1x8xf32, #tpu.memory_space<vmem>>, vector<1x8xf32>,
    return
  }
  func.func @transform_0(%arg0: i32) -> (i32, i32) {
    %c0_i32 = arith.constant 0 : i32
    %c0_i32_0 = arith.constant 0 : i32
    return %arg0, %c0_i32 : i32, i32
  }
  func.func @transform_1(%arg0: i32) -> (i32, i32) {
    %c0_i32 = arith.constant 0 : i32
    %c0_i32_0 = arith.constant 0 : i32
    %c0_i32_1 = arith.constant 0 : i32
    return %c0_i32, %c0_i32_0 : i32, i32
  }
  func.func @transform_2(%arg0: i32) -> (i32, i32) {
    %c0_i32 = arith.constant 0 : i32
    %c0_i32_0 = arith.constant 0 : i32
    %c0_i32_1 = arith.constant 0 : i32
    return %c0_i32, %c0_i32_0 : i32, i32
  }
  func.func @transform_3(%arg0: i32) -> (i32, i32) {
    %c0_i32 = arith.constant 0 : i32
    %c0_i32_0 = arith.constant 0 : i32
    %c0_i32_1 = arith.constant 0 : i32
    return %c0_i32, %c0_i32_0 : i32, i32
  }
  func.func @transform_4(%arg0: i32) -> (i32, i32) {
    %c0_i32 = arith.constant 0 : i32
    %c0_i32_0 = arith.constant 0 : i32
    return %c0_i32, %arg0 : i32, i32
  }
}

</mosaic_0001>

<bundles_post_ra>
// kernel: tpu_custom_call.1
= control target key start
LH: loop header
LB: loop body
LE: loop exit
PB: predicated region body
PF: predicated region fallthrough
CT: control target
= control target key end

     0   :  { %9 = vsyncpa [#allocation3], 0  ;;  %s444_s0 = inlined_call_operand.hbm [shape: f32[8,36], index: 0, kind: input, shape index: {}]   ;;  %s445_s1 = inlined_call_operand.vmem [shape: f32[16,36], index: 1, kind: input, shape index: {}]   ;;  %s446_s2 = inlined_call_operand.vmem [shape: f32[4,16], index: 2, kind: input, shape index: {}]   ;;  %s447_s3 = inlined_call_operand.vmem [shape: f32[16,4], index: 3, kind: input, shape index: {}]   ;;  %s448_s4 = inlined_call_operand.hbm [shape: f32[1,8], index: 4, kind: output, shape index: {}]  }
   0x1   :  { %10 = vsyncpa [#allocation4], 0  ;;  %s365_s15 = smov [#allocation2]   ;;  %s317_s19 = scalar_lea.hbm %s444_s0, 128 }
   0x2   :  { %s17_s16 = sshll.u32 %s365_s15, 4  ;;  %p318_p0 = scmp.ne.s32.totalorder %s444_s0, %s317_s19  ;;  %s18_s16 = int_to_ptr.vmem [resolvable:$true] %s17_s16 }
   0x3   :  { %p321_p1 = scmp.lt.u32.totalorder %s317_s19, %s444_s0 }
   0x5   :  { %p323_p2 = pnand %p321_p1, %p318_p0 }
   0x7   :  { %326 = shalt.err (!%p323_p2)
}
   0x8   :  { %s327_s24 = scalar_lea.vmem %s18_s16, 128  ;;  %p332_p4 = scmp.lt.s32.totalorder %s18_s16, %s18_s16 }
   0x9   :  { %p328_p3 = scmp.ne.s32.totalorder %s18_s16, %s327_s24  ;;  %p333_p5 = scmp.lt.s32.totalorder %s327_s24, %s327_s24 }
   0xb   :  { %p334_p6 = por %p333_p5, %p332_p4 }
   0xd   :  { %p335_p7 = pnand %p334_p6, %p328_p3 }
   0xf   :  { %338 = shalt.err (!%p335_p7)
}
  0x10   :  { %20 = dma.hbm_to_vmem [thread:$0]  %s444_s0, 128, %s18_s16, [#allocation3]  }
  0x11   :  { %361 = dma.done.wait [#allocation3], 128  }
  0x12   :  { %362 = vsyncadd [#allocation3], 4294967168  ;;  %v366_v0 = vmov 0   ;;  %vm45_vm0 = vcmask 293888   ;;  %v30_v1 = vld [vmem:[#allocation2] sm:$0xff]  ;;  %v32_v4 = vld [vmem:[%s445_s1 + $0x8] sm:$0xff] }
  0x13   :  { %305 = vset.pattern.permute.xlu0 %v366_v0  ;;  %v31_v2 = vld [vmem:[%s445_s1] sm:$0xff]  ;;  %281 = vmatprep.subr.msk.mxu0 %vm45_vm0, %v30_v1  ;;  %v34_v5 = vld [vmem:[%s447_s3 + $0x8] sm:$0xff]  ;;  %v367_v6 = vmov 0.0|0.0   ;;  %vm368_vm1 = vmmov 0   ;;  %v369_v7 = vmov 0.0   ;;  %v370_v9 = vmov 1  }
  0x14   :  { %283 = vmatprep.mubr.msk.f32.mxu0 %vm45_vm0, %v31_v2  ;;  %v33_v3 = vld [vmem:[%s447_s3] sm:$0xff]  ;;  %282 = vmatpush3.xpose.msk.msra.mxu0 %vm45_vm0, %v30_v1  ;;  %v371_v10 = vmov 3   ;;  %v372_v12 = vmov 2   ;;  %vm151_vm4 = vcmask 130048   ;;  %vm231_vm5 = vcmask 60416  }
  0x15   :  { %37 = vperm.xlu0 %305, %v33_v3   ;;  %293 = vmatprep.subr.bf16.mxu1 %v367_v6  ;;  %v145_v8 = vld [vmem:[%s447_s3] sm:$0xf]  ;;  %vm252_vm6 = vcmask 57344  }
  0x16   :  { %290 = vmatprep.mubr.msk.f32.mxu1 %vm368_vm1, %v369_v7  ;;  %306 = vset.pattern.permute.xlu1 %v370_v9  ;;  %v239_v11 = vld [vmem:[%s447_s3] sm:$0x1] }
  0x17   :  { %284 = vmatmul.mubr.msk.f32.vlgmr.msra.gmra.mrb[0].mxu0 %vm45_vm0, %v32_v4  ;;  %148 = vperm.xlu1 %306, %v145_v8   ;;  %v144_v32 = vld [vmem:[%s446_s2] sm:$0xf]  ;;  %s373_s2 = smov [#allocation5]  }
  0x18   :  { %s260_s12 = sshll.u32 %s373_s2, 4  ;;  %s261_s12 = int_to_ptr.vmem [resolvable:$true] %s260_s12 }
  0x19   :  { %42 = vperm.xlu0 %305, %v34_v5   ;;  %s339_s13 = scalar_lea.vmem %s261_s12, 16  ;;  %s343_s14 = scalar_lea.vmem %s261_s12, 32 }
  0x1a   :  { %p340_p8 = scmp.ne.s32.totalorder %s261_s12, %s339_s13  ;;  %p344_p9 = scmp.lt.s32.totalorder %s261_s12, %s261_s12 }
  0x1b   :  { %307 = vset.pattern.permute.xlu1 %v372_v12  ;;  %p345_p10 = scmp.lt.s32.totalorder %s343_s14, %s339_s13 }
  0x1c   :  { %227 = vperm.xlu1 %307, %v145_v8  }
  0x1d   :  { %308 = vset.pattern.permute.xlu0 %v371_v10  ;;  %p346_p11 = por %p345_p10, %p344_p9 }
  0x1e   :  { %242 = vperm.xlu0 %308, %v239_v11  }
  0x1f   :  { %p347_p12 = pnand %p346_p11, %p340_p8 }
  0x94   :  { %v38_v13 = vpop.permute.xlu0 %37 }
  0x96   :  { %v149_v33 = vpop.permute.xlu1 %148 }
  0x98   :  { %v43_v14 = vpop.permute.xlu0 %42 }
  0x9b   :  { %v228_v37 = vpop.permute.xlu1 %227 }
  0x9d   :  { %v243_v46 = vpop.permute.xlu0 %242 }
  0xea   :  { %v285_v15 = vpop.f32.mrb[0].mxu0 }
  0xeb   :  { %v127_v16 = vadd.f32 %v285_v15, %v43_v14  ;;  %v121_v17 = vpop.f32.mrb[1].mxu0 }
  0xec   :  { %v122_v18 = vadd.f32 %v121_v17, %v38_v13 }
  0xed   :  { %v134_v19 = vmul.f32 1.442695, %v127_v16  ;;  %vm131_vm2 = vcmp.gt.f32.partialorder %v127_v16, 0.0 }
  0xee   :  { %v132_v20 = vmul.f32 1.442695, %v122_v18  ;;  %vm130_vm3 = vcmp.gt.f32.partialorder %v122_v18, 0.0 }
  0xef   :  { %309 = vpow2.f32 %v134_v19 }
  0xf0   :  { %311 = vpow2.f32 %v132_v20 }
  0xf9   :  { %v310_v21 = vpop.eup %309 }
  0xfa   :  { %v312_v22 = vpop.eup %311  ;;  %v273_v23 = vadd.f32 -1.0, %v310_v21 }
  0xfb   :  { %v272_v24 = vadd.f32 -1.0, %v312_v22 }
  0xfc   :  { %v139_v25 = vmul.f32 1.6732632, %v273_v23 }
  0xfd   :  { %v138_v26 = vmul.f32 1.6732632, %v272_v24 }
  0xfe   :  { %v141_v27 = vsel %vm131_vm2, %v127_v16, %v139_v25 }
  0xff   :  { %v140_v28 = vsel %vm130_vm3, %v122_v18, %v138_v26  ;;  %v143_v29 = vmul.f32 1.050701, %v141_v27 }
 0x100   :  { %v142_v30 = vmul.f32 1.050701, %v140_v28 }
 0x102   :  { %v294_v31 = vpack.c.bf16 %v143_v29, %v142_v30 }
 0x104   :  { %295 = vmatpush3.bf16.msra.mxu1 %v294_v31 }
 0x107   :  { %291 = vmatmul.mubr.msk.f32.vlgmr.msra.gmra.mrb[0].mxu1 %vm151_vm4, %v144_v32 }
 0x1da   :  { %v221_v34 = vpop.f32.mrb[0].mxu1 }
 0x1db   :  { %v222_v35 = vadd.f32 %v221_v34, %v149_v33  ;;  %v292_v36 = vpop.f32.mrb[1].mxu1 }
 0x1dd   :  { %v225_v38 = vmax.f32 %v222_v35, 0.0 }
 0x1df   :  { %v230_v39 = vmul.f32 %v228_v37, %v225_v38 }
 0x1e1   :  { %v232_v40 = vsel %vm231_vm5, %v230_v39, 0.0 }
 0x1e2   :  { %v233_v41 = vrot.slane %v232_v40, 4 }
 0x1e4   :  { %v234_v42 = vadd.f32 %v233_v41, %v232_v40 }
 0x1e6   :  { %v235_v43 = vrot.slane %v234_v42, 2 }
 0x1e8   :  { %v236_v44 = vadd.f32 %v235_v43, %v234_v42 }
 0x1ea   :  { %v237_v45 = vrot.slane %v236_v44, 1 }
 0x1ec   :  { %v238_v47 = vadd.f32 %v237_v45, %v236_v44 }
 0x1ee   :  { %v245_v48 = vadd.f32 %v243_v46, %v238_v47 }
 0x1f0   :  { %v246_v49 = vsub.f32 0.0, %v245_v48 }
 0x1f2   :  { %v247_v50 = vmul.f32 1.442695, %v246_v49 }
 0x1f4   :  { %313 = vpow2.f32 %v247_v50 }
 0x1fe   :  { %v314_v51 = vpop.eup %313 }
 0x1ff   :  { %v249_v52 = vadd.f32 1.0, %v314_v51 }
 0x201   :  { %315 = vrcp.f32 %v249_v52 }
 0x20b   :  { %v316_v53 = vpop.eup %315 }
 0x20c   :  { %253 = vst.msk [vmem:[#allocation5] sm:$0x1] %vm252_vm6, %v316_v53 }
 0x20d   :  { %350 = shalt.err (!%p347_p12)
}
 0x20e   :  { %s351_s17 = scalar_lea.hbm %s448_s4, 16 }
 0x20f   :  { %p352_p13 = scmp.ne.s32.totalorder %s448_s4, %s351_s17  ;;  %p355_p0 = scmp.lt.u32.totalorder %s351_s17, %s448_s4 }
 0x211   :  { %p357_p1 = pnand %p355_p0, %p352_p13 }
 0x213   :  { %360 = shalt.err (!%p357_p1)
}
 0x214   :  { %263 = dma.vmem_to_hbm [thread:$0]  %s261_s12, 16, %s448_s4, [#allocation4]  }
 0x215   :  { %363 = dma.done.wait [#allocation4], 16  }
 0x216   :  { %364 = vsyncadd [#allocation4], 4294967280 }
 0x217   :  { %267 = vsyncpa [#allocation3], 1 }
 0x218   :  { %268 = vsyncpa [#allocation4], 1 }

</bundles_post_ra>
